<compile_context>
chip_gen: v6e
topology: v6e:2x2x1
jax: 0.10.0
libtpu: 0.0.40
codegen_flags: <defaults>
</compile_context>

<pallas_src>
import functools

import jax
import jax.numpy as jnp
from jax.experimental import pallas as pl
from jax.experimental.pallas import tpu as pltpu

LANES = 128          # TPU lane width (last dim of every block)
MAX_ROW_TILE = 1024  # 1024 x 128 f32 = 512 KiB per input block


def _round_up(a, b):
    return (a + b - 1) // b * b


def _focal_partial_kernel(x_ref, t_ref, o_ref, *, gamma, n_valid, row_tile):
    """One grid step: focal loss over a (row_tile, 128) tile, folded to an
    (8, 128) partial-sum tile written to this step's output block."""
    x = x_ref[...].astype(jnp.float32)
    t = t_ref[...].astype(jnp.float32)

    # BCE-with-logits:  x - x*t + max(-x,0) + log(exp(-max) + exp(-x-max))
    # The log term equals log1p(exp(-|x|)) exactly (shared softplus).
    lp_x = jnp.log1p(jnp.exp(-jnp.abs(x)))
    loss = x - x * t + jnp.maximum(-x, 0.0) + lp_x

    # invprobs = logsigmoid(-x*(2t-1)) in the numerically stable form.
    # (Kept exact for arbitrary targets; |z| == |x| only holds for 0/1 t.)
    z = -x * (t * 2.0 - 1.0)
    invprobs = jnp.minimum(z, 0.0) - jnp.log1p(jnp.exp(-jnp.abs(z)))

    loss = jnp.exp(invprobs * gamma) * loss

    # Mask the zero-padded tail (only emitted when padding actually exists).
    block_elems = row_tile * LANES
    if n_valid % block_elems != 0:
        i = pl.program_id(0)
        row = jax.lax.broadcasted_iota(jnp.int32, loss.shape, 0)
        lane = jax.lax.broadcasted_iota(jnp.int32, loss.shape, 1)
        # global element index; int32 is fine for < 2^31 elements
        idx = (i * row_tile + row) * LANES + lane
        loss = jnp.where(idx < n_valid, loss, 0.0)

    # Fold (row_tile, 128) -> (8, 128) with pure vreg adds (VPU only).
    partial = loss.reshape(row_tile // 8, 8, LANES).sum(axis=0)
    o_ref[...] = partial.reshape(1, 8, LANES)


def focal_loss(x, target, gamma=2.0):
    if x.shape != target.shape:
        raise ValueError(
            "Target size ({}) must be the same as input size ({})".format(
                target.shape, x.shape
            )
        )

    n = int(x.size)
    rows = _round_up(n, LANES) // LANES
    row_tile = min(MAX_ROW_TILE, _round_up(rows, 8))
    rows_padded = _round_up(rows, row_tile)
    n_padded = rows_padded * LANES
    pad = n_padded - n

    xf = x.reshape(-1)
    tf = target.reshape(-1)
    if pad:
        xf = jnp.pad(xf, (0, pad))
        tf = jnp.pad(tf, (0, pad))
    x2 = xf.reshape(rows_padded, LANES)
    t2 = tf.reshape(rows_padded, LANES)

    num_blocks = rows_padded // row_tile

    kernel = functools.partial(
        _focal_partial_kernel,
        gamma=float(gamma),
        n_valid=n,
        row_tile=row_tile,
    )

    partials = pl.pallas_call(
        kernel,
        out_shape=jax.ShapeDtypeStruct((num_blocks, 8, LANES), jnp.float32),
        grid_spec=pltpu.PrefetchScalarGridSpec(
            num_scalar_prefetch=0,
            grid=(num_blocks,),
            in_specs=[
                pl.BlockSpec((row_tile, LANES), lambda i: (i, 0)),
                pl.BlockSpec((row_tile, LANES), lambda i: (i, 0)),
            ],
            out_specs=pl.BlockSpec((1, 8, LANES), lambda i: (i, 0, 0)),
        ),
        compiler_params=pltpu.CompilerParams(
            dimension_semantics=("parallel",),
        ),
    )(x2, t2)

    total = jnp.sum(partials, dtype=jnp.float32)
    return (total / n).astype(jnp.float32)


def _focal_loss_ref(x, target, gamma=2.0):
    # Literal transcription of the PyTorch module (unsimplified form).
    x = x.astype(jnp.float32)
    t = target.astype(jnp.float32)
    max_val = jnp.maximum(-x, 0.0)
    loss = x - x * t + max_val + jnp.log(
        jnp.exp(-max_val) + jnp.exp(-x - max_val)
    )
    invprobs = jax.nn.log_sigmoid(-x * (t * 2.0 - 1.0))
    loss = jnp.exp(invprobs * gamma) * loss
    return loss.mean()


if __name__ == "__main__":
    key = jax.random.PRNGKey(0)
    k1, k2 = jax.random.split(key)
    # logits and binary targets, NCHW like the PyTorch module would receive
    x = jax.random.normal(k1, (2, 4, 16, 16), dtype=jnp.float32)
    target = (jax.random.uniform(k2, (2, 4, 16, 16)) > 0.5).astype(jnp.float32)

    out = focal_loss(x, target, gamma=2.0)
    out = jax.block_until_ready(out)

    ref = _focal_loss_ref(x, target, gamma=2.0)
    assert jnp.allclose(out, ref, rtol=1e-5, atol=1e-5), (out, ref)

    # also exercise a non-tile-aligned shape to verify the padding mask
    x3 = jax.random.normal(k1, (3, 5, 7, 11), dtype=jnp.float32)
    t3 = (jax.random.uniform(k2, (3, 5, 7, 11)) > 0.5).astype(jnp.float32)
    out3 = jax.block_until_ready(focal_loss(x3, t3, gamma=2.0))
    ref3 = _focal_loss_ref(x3, t3, gamma=2.0)
    assert jnp.allclose(out3, ref3, rtol=1e-5, atol=1e-5), (out3, ref3)

    print("KERNEL_OK")
</pallas_src>

<mosaic_0001>
module attributes {stable_mosaic.version = 11 : i64} {
  func.func @_focal_partial_kernel(%arg0: i32, %arg1: memref<16x128xf32, #tpu.memory_space<vmem>>, %arg2: memref<16x128xf32, #tpu.memory_space<vmem>>, %arg3: memref<1x8x128xf32, #tpu.memory_space<vmem>>) attributes {dimension_semantics = [#tpu.dimension_semantics<parallel>], iteration_bounds = array<i64: 1>, scalar_prefetch = 0 : i64, scratch_operands = 0 : i64, tpu.core_type = #tpu.core_type<tc>, window_params = [{transform_indices = @transform_0, window_bounds = array<i64: 16, 128>}, {transform_indices = @transform_1, window_bounds = array<i64: 16, 128>}, {transform_indices = @transform_2, window_bounds = array<i64: 1, 8, 128>}]} {
    %c0 = arith.constant 0 : index
    %c0_0 = arith.constant 0 : index
    %0 = vector.load %arg1[%c0, %c0_0] : memref<16x128xf32, #tpu.memory_space<vmem>>, vector<16x128xf32>
    %c0_1 = arith.constant 0 : index
    %c0_2 = arith.constant 0 : index
    %1 = vector.load %arg2[%c0_1, %c0_2] : memref<16x128xf32, #tpu.memory_space<vmem>>, vector<16x128xf32>
    %2 = math.absf %0 : vector<16x128xf32>
    %cst = arith.constant 0.000000e+00 : f32
    %3 = vector.broadcast %cst : f32 to vector<16x128xf32>
    %4 = arith.subf %3, %2 : vector<16x128xf32>
    %5 = math.exp %4 : vector<16x128xf32>
    %6 = math.log1p %5 : vector<16x128xf32>
    %7 = arith.mulf %0, %1 : vector<16x128xf32>
    %8 = arith.subf %0, %7 : vector<16x128xf32>
    %cst_3 = arith.constant 0.000000e+00 : f32
    %9 = vector.broadcast %cst_3 : f32 to vector<16x128xf32>
    %10 = arith.subf %9, %0 : vector<16x128xf32>
    %cst_4 = arith.constant 0.000000e+00 : f32
    %11 = vector.broadcast %cst_4 : f32 to vector<16x128xf32>
    %12 = arith.maximumf %10, %11 : vector<16x128xf32>
    %13 = arith.addf %8, %12 : vector<16x128xf32>
    %14 = arith.addf %13, %6 : vector<16x128xf32>
    %cst_5 = arith.constant 0.000000e+00 : f32
    %15 = vector.broadcast %cst_5 : f32 to vector<16x128xf32>
    %16 = arith.subf %15, %0 : vector<16x128xf32>
    %cst_6 = arith.constant 2.000000e+00 : f32
    %17 = vector.broadcast %cst_6 : f32 to vector<16x128xf32>
    %18 = arith.mulf %1, %17 : vector<16x128xf32>
    %cst_7 = arith.constant 1.000000e+00 : f32
    %19 = vector.broadcast %cst_7 : f32 to vector<16x128xf32>
    %20 = arith.subf %18, %19 : vector<16x128xf32>
    %21 = arith.mulf %16, %20 : vector<16x128xf32>
    %cst_8 = arith.constant 0.000000e+00 : f32
    %22 = vector.broadcast %cst_8 : f32 to vector<16x128xf32>
    %23 = arith.minimumf %21, %22 : vector<16x128xf32>
    %24 = math.absf %21 : vector<16x128xf32>
    %cst_9 = arith.constant 0.000000e+00 : f32
    %25 = vector.broadcast %cst_9 : f32 to vector<16x128xf32>
    %26 = arith.subf %25, %24 : vector<16x128xf32>
    %27 = math.exp %26 : vector<16x128xf32>
    %28 = math.log1p %27 : vector<16x128xf32>
    %29 = arith.subf %23, %28 : vector<16x128xf32>
    %cst_10 = arith.constant 2.000000e+00 : f32
    %30 = vector.broadcast %cst_10 : f32 to vector<16x128xf32>
    %31 = arith.mulf %29, %30 : vector<16x128xf32>
    %32 = math.exp %31 : vector<16x128xf32>
    %33 = arith.mulf %32, %14 : vector<16x128xf32>
    %34 = vector.shape_cast %33 : vector<16x128xf32> to vector<2x8x128xf32>
    %cst_11 = arith.constant dense<0.000000e+00> : vector<8x128xf32>
    %35 = vector.multi_reduction <add>, %34, %cst_11 [0] : vector<2x8x128xf32> to vector<8x128xf32>
    %36 = vector.shape_cast %35 : vector<8x128xf32> to vector<1x8x128xf32>
    %c0_12 = arith.constant 0 : index
    %c0_13 = arith.constant 0 : index
    %c0_14 = arith.constant 0 : index
    %37 = vector.load %arg3[%c0_12, %c0_13, %c0_14] : memref<1x8x128xf32, #tpu.memory_space<vmem>>, vector<1x8x128xf32>
    tpu.vector_store %arg3[%c0_12, %c0_13, %c0_14], %36 {strides = array<i32>} : memref<1x8x128xf32, #tpu.memory_space<vmem>>, vector<1x8x128xf32>,
    return
  }
  func.func @transform_0(%arg0: i32) -> (i32, i32) {
    %c0_i32 = arith.constant 0 : i32
    %c0_i32_0 = arith.constant 0 : i32
    return %arg0, %c0_i32 : i32, i32
  }
  func.func @transform_1(%arg0: i32) -> (i32, i32) {
    %c0_i32 = arith.constant 0 : i32
    %c0_i32_0 = arith.constant 0 : i32
    return %arg0, %c0_i32 : i32, i32
  }
  func.func @transform_2(%arg0: i32) -> (i32, i32, i32) {
    %c0_i32 = arith.constant 0 : i32
    %c0_i32_0 = arith.constant 0 : i32
    %c0_i32_1 = arith.constant 0 : i32
    return %arg0, %c0_i32, %c0_i32_0 : i32, i32, i32
  }
}

</mosaic_0001>

<bundles_post_ra>
// kernel: tpu_custom_call.1
= control target key start
LH: loop header
LB: loop body
LE: loop exit
PB: predicated region body
PF: predicated region fallthrough
CT: control target
= control target key end

     0   :  { %7 = vsyncpa [#allocation3], 0  ;;  %s290_s0 = inlined_call_operand.hbm [shape: f32[16,128], index: 0, kind: input, shape index: {}]   ;;  %s291_s1 = inlined_call_operand.hbm [shape: f32[16,128], index: 1, kind: input, shape index: {}]   ;;  %s292_s2 = inlined_call_operand.hbm [shape: f32[1,8,128], index: 2, kind: output, shape index: {}]  }
   0x1   :  { %8 = vsyncpa [#allocation6], 0 }
   0x2   :  { %9 = vsyncpa [#allocation4], 0  ;;  %s237_s9 = smov [#allocation2]  }
   0x3   :  { %s15_s10 = sshll.u32 %s237_s9, 4  ;;  %s16_s10 = int_to_ptr.vmem [resolvable:$true] %s15_s10 }
   0x4   :  { %s179_s11 = scalar_lea.vmem %s16_s10, 256  ;;  %p184_p1 = scmp.lt.s32.totalorder %s16_s10, %s16_s10 }
   0x5   :  { %p180_p0 = scmp.ne.s32.totalorder %s16_s10, %s179_s11  ;;  %p185_p2 = scmp.lt.s32.totalorder %s179_s11, %s179_s11 }
   0x7   :  { %p186_p3 = por %p185_p2, %p184_p1 }
   0x9   :  { %p187_p4 = pnand %p186_p3, %p180_p0 }
   0xb   :  { %190 = shalt.err (!%p187_p4)
}
   0xc   :  { %s238_s12 = smov 128   ;;  %s239_s13 = smov 8  }
   0xd   :  { %21 = dma.hbm_to_vmem [thread:$0]  %s290_s0, 256, %s16_s10, [#allocation3], %s238_s12, %s238_s12, %s239_s13  }
   0xe   :  { %s240_s16 = smov [#allocation5]  }
   0xf   :  { %s27_s17 = sshll.u32 %s240_s16, 4  ;;  %s28_s17 = int_to_ptr.vmem [resolvable:$true] %s27_s17 }
  0x10   :  { %s199_s18 = scalar_lea.vmem %s28_s17, 256  ;;  %p204_p6 = scmp.lt.s32.totalorder %s28_s17, %s28_s17 }
  0x11   :  { %p200_p5 = scmp.ne.s32.totalorder %s28_s17, %s199_s18  ;;  %p205_p7 = scmp.lt.s32.totalorder %s199_s18, %s199_s18 }
  0x13   :  { %p206_p8 = por %p205_p7, %p204_p6 }
  0x15   :  { %p207_p9 = pnand %p206_p8, %p200_p5 }
  0x17   :  { %210 = shalt.err (!%p207_p9)
}
  0x18   :  { %33 = dma.hbm_to_vmem [thread:$0]  %s291_s1, 256, %s28_s17, [#allocation6], %s238_s12, %s238_s12, %s239_s13  }
  0x19   :  { %231 = dma.done.wait [#allocation3], 256  }
  0x1a   :  { %232 = vsyncadd [#allocation3], 4294967040 }
  0x1b   :  { %233 = dma.done.wait [#allocation6], 256  }
  0x1c   :  { %234 = vsyncadd [#allocation6], 4294967040  ;;  %v263_v0 = vld [vmem:[#allocation2] sm:$0xff]  ;;  %v265_v1 = vld [vmem:[#allocation2 + $0x8] sm:$0xff]  ;;  %s241_s0 = smov [#allocation7]  }
  0x1d   :  { %v42_v2 = vld [vmem:[#allocation5] sm:$0xff]  ;;  %v267_v3 = vld [vmem:[#allocation5 + $0x8] sm:$0xff]  ;;  %v74_v4 = vsub.f32 0.0, %v263_v0  ;;  %v75_v5 = vsub.f32 0.0, %v265_v1  ;;  %v44_v12 = vand.u32 2147483647, %v263_v0 }
  0x1e   :  { %v82_v6 = vmul.f32 2.0, %v42_v2  ;;  %v83_v7 = vmul.f32 2.0, %v267_v3  ;;  %v45_v14 = vand.u32 2147483647, %v265_v1  ;;  %v70_v54 = vmul.f32 %v42_v2, %v263_v0  ;;  %s134_s1 = sshll.u32 %s241_s0, 4  ;;  %s135_s1 = int_to_ptr.vmem [resolvable:$true] %s134_s1 }
  0x1f   :  { %v46_v18 = vsub.f32 0.0, %v44_v12  ;;  %v71_v57 = vmul.f32 %v267_v3, %v265_v1  ;;  %v77_v3 = vmax.f32 %v75_v5, 0.0  ;;  %s211_s21 = scalar_lea.vmem %s135_s1, 128  ;;  %p216_p11 = scmp.lt.s32.totalorder %s135_s1, %s135_s1 }
  0x20   :  { %v144_v8 = vadd.f32 -1.0, %v82_v6  ;;  %v145_v9 = vadd.f32 -1.0, %v83_v7  ;;  %v47_v20 = vsub.f32 0.0, %v45_v14  ;;  %v72_v6 = vsub.f32 %v263_v0, %v70_v54  ;;  %p212_p10 = scmp.ne.s32.totalorder %s135_s1, %s211_s21  ;;  %p217_p12 = scmp.lt.s32.totalorder %s211_s21, %s211_s21 }
  0x21   :  { %v48_v22 = vmul.f32 1.442695, %v46_v18  ;;  %v76_v7 = vmax.f32 %v74_v4, 0.0 }
  0x22   :  { %v86_v10 = vmul.f32 %v144_v8, %v74_v4  ;;  %v87_v11 = vmul.f32 %v145_v9, %v75_v5  ;;  %v50_v23 = vmul.f32 1.442695, %v47_v20  ;;  %v73_v9 = vsub.f32 %v265_v1, %v71_v57  ;;  %p218_p13 = por %p217_p12, %p216_p11 }
  0x23   :  { %v78_v12 = vadd.f32 %v76_v7, %v72_v6 }
  0x24   :  { %v90_v13 = vand.u32 2147483647, %v86_v10  ;;  %v91_v15 = vand.u32 2147483647, %v87_v11  ;;  %v88_v40 = vmin.f32 %v86_v10, 0.0  ;;  %v89_v43 = vmin.f32 %v87_v11, 0.0  ;;  %p219_p0 = pnand %p218_p13, %p212_p10 }
  0x25   :  { %v79_v14 = vadd.f32 %v77_v3, %v73_v9 }
  0x26   :  { %v92_v16 = vsub.f32 0.0, %v90_v13  ;;  %v93_v17 = vsub.f32 0.0, %v91_v15 }
  0x28   :  { %v94_v19 = vmul.f32 1.442695, %v92_v16  ;;  %v96_v21 = vmul.f32 1.442695, %v93_v17 }
  0x2a   :  { %151 = vpow2.f32 %v94_v19 }
  0x2b   :  { %153 = vpow2.f32 %v96_v21 }
  0x2c   :  { %155 = vpow2.f32 %v48_v22 }
  0x2d   :  { %157 = vpow2.f32 %v50_v23 }
  0x37   :  { %v152_v24 = vpop.eup %151 }
  0x38   :  { %v154_v25 = vpop.eup %153  ;;  %v98_v26 = vadd.f32 1.0, %v152_v24  ;;  %v101_v30 = vmul.f32 -0.5, %v152_v24  ;;  %v104_v35 = vand.u32 2147483647, %v152_v24 }
  0x39   :  { %v107_v27 = vadd.f32 1.0, %v154_v25  ;;  %v156_v28 = vpop.eup %155  ;;  %v110_v31 = vmul.f32 -0.5, %v154_v25  ;;  %v113_v37 = vand.u32 2147483647, %v154_v25 }
  0x3a   :  { %159 = vlog2.f32 %v98_v26  ;;  %v158_v29 = vpop.eup %157  ;;  %v52_v32 = vadd.f32 1.0, %v156_v28  ;;  %v102_v34 = vadd.f32 1.0, %v101_v30  ;;  %vm105_vm0 = vcmp.lt.f32.partialorder %v104_v35, 0.0004427343 }
  0x3b   :  { %161 = vlog2.f32 %v107_v27  ;;  %v61_v33 = vadd.f32 1.0, %v158_v29  ;;  %v111_v36 = vadd.f32 1.0, %v110_v31  ;;  %vm114_vm1 = vcmp.lt.f32.partialorder %v113_v37, 0.0004427343 }
  0x3c   :  { %163 = vlog2.f32 %v52_v32  ;;  %v103_v38 = vmul.f32 %v152_v24, %v102_v34  ;;  %v55_v49 = vmul.f32 -0.5, %v156_v28  ;;  %v64_v51 = vmul.f32 -0.5, %v158_v29 }
  0x3d   :  { %165 = vlog2.f32 %v61_v33  ;;  %v112_v41 = vmul.f32 %v154_v25, %v111_v36  ;;  %v58_v60 = vand.u32 2147483647, %v156_v28  ;;  %v67_v63 = vand.u32 2147483647, %v158_v29 }
  0x3e   :  { %v56_v56 = vadd.f32 1.0, %v55_v49  ;;  %v65_v61 = vadd.f32 1.0, %v64_v51 }
  0x3f   :  { %vm59_vm2 = vcmp.lt.f32.partialorder %v58_v60, 0.0004427343  ;;  %vm68_vm3 = vcmp.lt.f32.partialorder %v67_v63, 0.0004427343 }
  0x40   :  { %v57_v2 = vmul.f32 %v156_v28, %v56_v56  ;;  %v66_v11 = vmul.f32 %v158_v29, %v65_v61 }
  0x47   :  { %v160_v39 = vpop.eup %159 }
  0x48   :  { %v162_v42 = vpop.eup %161  ;;  %v100_v44 = vmul.f32 0.6931472, %v160_v39 }
  0x49   :  { %v109_v45 = vmul.f32 0.6931472, %v162_v42  ;;  %v164_v59 = vpop.eup %163 }
  0x4a   :  { %v106_v46 = vsel %vm105_vm0, %v103_v38, %v100_v44  ;;  %v166_v62 = vpop.eup %165  ;;  %v54_v8 = vmul.f32 0.6931472, %v164_v59 }
  0x4b   :  { %v115_v47 = vsel %vm114_vm1, %v112_v41, %v109_v45  ;;  %v116_v48 = vsub.f32 %v88_v40, %v106_v46  ;;  %v63_v10 = vmul.f32 0.6931472, %v166_v62 }
  0x4c   :  { %v117_v50 = vsub.f32 %v89_v43, %v115_v47  ;;  %v60_v13 = vsel %vm59_vm2, %v57_v2, %v54_v8 }
  0x4d   :  { %v118_v52 = vmul.f32 2.0, %v116_v48  ;;  %v69_v15 = vsel %vm68_vm3, %v66_v11, %v63_v10  ;;  %v80_v16 = vadd.f32 %v78_v12, %v60_v13 }
  0x4e   :  { %v119_v53 = vmul.f32 2.0, %v117_v50  ;;  %v81_v17 = vadd.f32 %v79_v14, %v69_v15 }
  0x4f   :  { %v120_v55 = vmul.f32 1.442695, %v118_v52 }
  0x50   :  { %v122_v58 = vmul.f32 1.442695, %v119_v53 }
  0x51   :  { %167 = vpow2.f32 %v120_v55 }
  0x52   :  { %169 = vpow2.f32 %v122_v58 }
  0x5e   :  { %v168_v18 = vpop.eup %167 }
  0x5f   :  { %v170_v0 = vpop.eup %169  ;;  %v124_v4 = vmul.f32 %v168_v18, %v80_v16 }
  0x60   :  { %v125_v19 = vmul.f32 %v170_v0, %v81_v17 }
  0x62   :  { %v126_v20 = vadd.f32 %v125_v19, %v124_v4 }
  0x64   :  { %127 = vst [vmem:[#allocation7] sm:$0xff] %v126_v20 }
  0x65   :  { %222 = shalt.err (!%p219_p0)
}
  0x66   :  { %137 = dma.vmem_to_hbm [thread:$0]  %s135_s1, 128, %s292_s2, [#allocation4]  }
  0x67   :  { %235 = dma.done.wait [#allocation4], 128  }
  0x68   :  { %236 = vsyncadd [#allocation4], 4294967168 }
  0x69   :  { %141 = vsyncpa [#allocation3], 1 }
  0x6a   :  { %142 = vsyncpa [#allocation6], 1 }
  0x6b   :  { %143 = vsyncpa [#allocation4], 1 }

</bundles_post_ra>
